<compile_context>
chip_gen: v6e
topology: v6e:2x2x1
jax: 0.10.0
libtpu: 0.0.40
codegen_flags: <defaults>
</compile_context>

<pallas_src>
import jax
import jax.numpy as jnp
from jax import lax
from jax.experimental import pallas as pl
from jax.experimental.pallas import tpu as pltpu


def _cross_attn_kernel(x1_ref, x2_ref, x3_ref,
                       wq_ref, wk_ref, wv_ref, wp_ref, bp_ref,
                       o_ref, acc_ref):
    """One grid step = (batch sub-block b, head h).

    x1_ref: (Bb, N, C)    x2_ref/x3_ref: (Bb, N1, C)
    wq/wk/wv/wp_ref: (1, Dh, C) bf16 per-head slabs (C last = lane-dense)
    bp_ref: (1, C) f32    o_ref: (Bb, N, C)    acc_ref: (Bb, N, C) f32 scratch
    """
    h = pl.program_id(1)
    Bb, N, C = x1_ref.shape
    _, N1, _ = x2_ref.shape
    Dh = wq_ref.shape[1]

    # Head-reduction accumulator: init on the first head.
    @pl.when(h == 0)
    def _init():
        acc_ref[...] = jnp.zeros_like(acc_ref)

    # Flatten the (tiny) batch sub-block into the sublane dim -> plain 2D
    # matmuls; cast operands to bf16, accumulate in f32.
    x1 = x1_ref[...].reshape(Bb * N, C).astype(jnp.bfloat16)
    x2 = x2_ref[...].reshape(Bb * N1, C).astype(jnp.bfloat16)
    x3 = x3_ref[...].reshape(Bb * N1, C).astype(jnp.bfloat16)

    wq = wq_ref[0]   # (Dh, C)  (qk scale pre-folded, bf16)
    wk = wk_ref[0]
    wv = wv_ref[0]
    wp = wp_ref[0]

    # q/k/v projections for this head: contract over the lane dim of both
    # operands (N·T matmul) -> no transposes, no lane-sparse weight tiles.
    nt = (((1,), (1,)), ((), ()))
    q = lax.dot_general(x1, wq, nt, preferred_element_type=jnp.float32)  # (Bb*N, Dh)
    k = lax.dot_general(x2, wk, nt, preferred_element_type=jnp.float32)  # (Bb*N1, Dh)
    v = lax.dot_general(x3, wv, nt, preferred_element_type=jnp.float32)  # (Bb*N1, Dh)

    q3 = q.reshape(Bb, N, Dh).astype(jnp.bfloat16)
    k3 = k.reshape(Bb, N1, Dh).astype(jnp.bfloat16)
    v3 = v.reshape(Bb, N1, Dh).astype(jnp.bfloat16)

    # Scores + numerically-stable softmax (exact divide for parity).
    s = jnp.einsum('bnd,bmd->bnm', q3, k3,
                   preferred_element_type=jnp.float32)        # (Bb, N, N1)
    m = jnp.max(s, axis=-1, keepdims=True)
    e = jnp.exp(s - m)
    p = e / jnp.sum(e, axis=-1, keepdims=True)

    # attn_drop p=0.0 -> identity.
    ctx = jnp.einsum('bnm,bmd->bnd', p.astype(jnp.bfloat16), v3,
                     preferred_element_type=jnp.float32)      # (Bb, N, Dh)

    # Per-head slice of the output projection; lane-dense (Bb*N, C) result,
    # accumulated over heads in f32 scratch.
    nn = (((1,), (0,)), ((), ()))
    yh = lax.dot_general(ctx.reshape(Bb * N, Dh).astype(jnp.bfloat16), wp, nn,
                         preferred_element_type=jnp.float32)  # (Bb*N, C)
    acc_ref[...] += yh.reshape(Bb, N, C)

    # Last head: add the projection bias and store.  proj_drop p=0.0 -> identity.
    @pl.when(h == pl.num_programs(1) - 1)
    def _finalize():
        o_ref[...] = (acc_ref[...] + bp_ref[...].astype(jnp.float32)
                      ).astype(o_ref.dtype)


def cross_attention_pallas(x1, x2, x3, wq, wk, wv, wp, bp, *,
                           num_heads, block_b=None):
    """x1: (B, N, C); x2/x3: (B, N1, C).

    wq/wk/wv/wp: (in_features, out_features) i.e. PRE-TRANSPOSED torch weights
    so y = x @ W (+ b).  bp: (C,) or (1, C).
    """
    B, N, C = x1.shape
    _, N1, _ = x2.shape
    assert x3.shape == (B, N1, C)
    assert C % num_heads == 0
    H = num_heads
    Dh = C // H
    scale = Dh ** (-0.5)

    if block_b is None:
        # Prefer >=2 batch steps so the 'parallel' axis can feed both v7x
        # TensorCores; on 1-TC chips (v5e/v6e) the extra step costs ~0.35 us,
        # negligible.  Small block_b also keeps the per-step footprint far
        # inside v7x's 64 MiB VMEM.
        cands = [d for d in range(1, B + 1)
                 if B % d == 0 and d <= 8 and (B // d >= 2 or B == 1)]
        block_b = max(cands) if cands else 1
    assert B % block_b == 0
    grid = (B // block_b, H)

    # Host-side (free) weight re-layout: per-head, lane-dense slabs (H, Dh, C).
    # qk scale is folded into Wq in f32 BEFORE the bf16 cast.
    wq_h = (wq * scale).reshape(C, H, Dh).transpose(1, 2, 0).astype(jnp.bfloat16)
    wk_h = wk.reshape(C, H, Dh).transpose(1, 2, 0).astype(jnp.bfloat16)
    wv_h = wv.reshape(C, H, Dh).transpose(1, 2, 0).astype(jnp.bfloat16)
    wp_h = wp.reshape(H, Dh, C).astype(jnp.bfloat16)
    bp2 = bp.reshape(1, C).astype(jnp.float32)

    grid_spec = pltpu.PrefetchScalarGridSpec(
        num_scalar_prefetch=0,
        grid=grid,
        in_specs=[
            pl.BlockSpec((block_b, N, C),  lambda b, h: (b, 0, 0)),   # x1
            pl.BlockSpec((block_b, N1, C), lambda b, h: (b, 0, 0)),   # x2
            pl.BlockSpec((block_b, N1, C), lambda b, h: (b, 0, 0)),   # x3
            pl.BlockSpec((1, Dh, C), lambda b, h: (h, 0, 0)),         # Wq (scaled)
            pl.BlockSpec((1, Dh, C), lambda b, h: (h, 0, 0)),         # Wk
            pl.BlockSpec((1, Dh, C), lambda b, h: (h, 0, 0)),         # Wv
            pl.BlockSpec((1, Dh, C), lambda b, h: (h, 0, 0)),         # Wproj
            pl.BlockSpec((1, C), lambda b, h: (0, 0)),                # bproj
        ],
        out_specs=pl.BlockSpec((block_b, N, C), lambda b, h: (b, 0, 0)),
        scratch_shapes=[pltpu.VMEM((block_b, N, C), jnp.float32)],    # head acc
    )

    return pl.pallas_call(
        _cross_attn_kernel,
        out_shape=jax.ShapeDtypeStruct((B, N, C), x1.dtype),
        grid_spec=grid_spec,
        compiler_params=pltpu.CompilerParams(
            dimension_semantics=("parallel", "arbitrary"),
            # Explicit budget: well under v7x's 64 MiB physical VMEM (with
            # headroom); v5e/v6e have 128 MiB so the same limit is safe there.
            vmem_limit_bytes=48 * 1024 * 1024,
        ),
    )(x1, x2, x3, wq_h, wk_h, wv_h, wp_h, bp2)


def cross_attention_ref(x1, x2, x3, wq, wk, wv, wp, bp, *, num_heads):
    """Pure-JAX reference mirroring the PyTorch forward (f32)."""
    B, N, C = x1.shape
    _, N1, _ = x3.shape
    Dh = C // num_heads
    scale = Dh ** (-0.5)
    q = (x1 @ wq).reshape(B, N, num_heads, Dh).transpose(0, 2, 1, 3)
    k = (x2 @ wk).reshape(B, N1, num_heads, Dh).transpose(0, 2, 1, 3)
    v = (x3 @ wv).reshape(B, N1, num_heads, Dh).transpose(0, 2, 1, 3)
    attn = jax.nn.softmax((q @ jnp.swapaxes(k, -2, -1)) * scale, axis=-1)
    out = (attn @ v).transpose(0, 2, 1, 3).reshape(B, N, C)
    return out @ wp + bp.reshape(1, C)


if __name__ == "__main__":
    # Small shapes consistent with the module: dim=32, num_heads=8 -> head_dim=4.
    B, N, N1, C, H = 2, 8, 16, 32, 8

    key = jax.random.PRNGKey(0)
    k1, k2, k3, kq, kk, kv, kp, kb = jax.random.split(key, 8)

    x1 = jax.random.normal(k1, (B, N, C), dtype=jnp.float32)
    x2 = jax.random.normal(k2, (B, N1, C), dtype=jnp.float32)
    x3 = jax.random.normal(k3, (B, N1, C), dtype=jnp.float32)

    # Deterministic synthetic parameters, stored as (in, out) = torch W^T.
    wq = 0.05 * jax.random.normal(kq, (C, C), dtype=jnp.float32)
    wk = 0.05 * jax.random.normal(kk, (C, C), dtype=jnp.float32)
    wv = 0.05 * jax.random.normal(kv, (C, C), dtype=jnp.float32)
    wp = 0.05 * jax.random.normal(kp, (C, C), dtype=jnp.float32)
    bp = 0.05 * jax.random.normal(kb, (1, C), dtype=jnp.float32)

    out = cross_attention_pallas(x1, x2, x3, wq, wk, wv, wp, bp, num_heads=H)
    out = jax.block_until_ready(out)

    ref = cross_attention_ref(x1, x2, x3, wq, wk, wv, wp, bp, num_heads=H)
    assert out.shape == (B, N, C)
    # Tolerance accounts for bf16 matmul operands (f32 accumulation, exact softmax).
    assert jnp.allclose(out, ref, atol=2e-2, rtol=2e-2), "mismatch vs reference"

    print("KERNEL_OK")
</pallas_src>

<mosaic_0001>
module attributes {stable_mosaic.version = 11 : i64} {
  func.func @_cross_attn_kernel(%arg0: i32, %arg1: i32, %arg2: memref<1x8x32xf32, #tpu.memory_space<vmem>>, %arg3: memref<1x16x32xf32, #tpu.memory_space<vmem>>, %arg4: memref<1x16x32xf32, #tpu.memory_space<vmem>>, %arg5: memref<1x4x32xbf16, #tpu.memory_space<vmem>>, %arg6: memref<1x4x32xbf16, #tpu.memory_space<vmem>>, %arg7: memref<1x4x32xbf16, #tpu.memory_space<vmem>>, %arg8: memref<1x4x32xbf16, #tpu.memory_space<vmem>>, %arg9: memref<1x32xf32, #tpu.memory_space<vmem>>, %arg10: memref<1x8x32xf32, #tpu.memory_space<vmem>>, %arg11: memref<1x8x32xf32, #tpu.memory_space<vmem>>) attributes {dimension_semantics = [#tpu.dimension_semantics<parallel>, #tpu.dimension_semantics<arbitrary>], iteration_bounds = array<i64: 2, 8>, scalar_prefetch = 0 : i64, scratch_operands = 1 : i64, tpu.core_type = #tpu.core_type<tc>, window_params = [{transform_indices = @transform_0, window_bounds = array<i64: 1, 8, 32>}, {transform_indices = @transform_1, window_bounds = array<i64: 1, 16, 32>}, {transform_indices = @transform_2, window_bounds = array<i64: 1, 16, 32>}, {transform_indices = @transform_3, window_bounds = array<i64: 1, 4, 32>}, {transform_indices = @transform_4, window_bounds = array<i64: 1, 4, 32>}, {transform_indices = @transform_5, window_bounds = array<i64: 1, 4, 32>}, {transform_indices = @transform_6, window_bounds = array<i64: 1, 4, 32>}, {pipeline_mode = #tpu.pipeline_mode<synchronous>, transform_indices = @transform_7, window_bounds = array<i64: 1, 32>}, {transform_indices = @transform_8, window_bounds = array<i64: 1, 8, 32>}]} {
    %c0_i32 = arith.constant 0 : i32
    %0 = arith.cmpi eq, %arg1, %c0_i32 : i32
    %1 = arith.extui %0 : i1 to i32
    %c0_i32_0 = arith.constant 0 : i32
    %2 = arith.cmpi ne, %1, %c0_i32_0 : i32
    scf.if %2 {
      %cst_35 = arith.constant 0.000000e+00 : f32
      %51 = vector.broadcast %cst_35 : f32 to vector<1x8x32xf32>
      %c0_36 = arith.constant 0 : index
      %c0_37 = arith.constant 0 : index
      %c0_38 = arith.constant 0 : index
      %52 = vector.load %arg11[%c0_36, %c0_37, %c0_38] : memref<1x8x32xf32, #tpu.memory_space<vmem>>, vector<1x8x32xf32>
      tpu.vector_store %arg11[%c0_36, %c0_37, %c0_38], %51 {strides = array<i32>} : memref<1x8x32xf32, #tpu.memory_space<vmem>>, vector<1x8x32xf32>,
    } else {
    }
    %c0 = arith.constant 0 : index
    %c0_1 = arith.constant 0 : index
    %c0_2 = arith.constant 0 : index
    %3 = vector.load %arg2[%c0, %c0_1, %c0_2] : memref<1x8x32xf32, #tpu.memory_space<vmem>>, vector<1x8x32xf32>
    %4 = vector.shape_cast %3 : vector<1x8x32xf32> to vector<8x32xf32>
    %5 = arith.truncf %4 : vector<8x32xf32> to vector<8x32xbf16>
    %c0_3 = arith.constant 0 : index
    %c0_4 = arith.constant 0 : index
    %c0_5 = arith.constant 0 : index
    %6 = vector.load %arg3[%c0_3, %c0_4, %c0_5] : memref<1x16x32xf32, #tpu.memory_space<vmem>>, vector<1x16x32xf32>
    %7 = vector.shape_cast %6 : vector<1x16x32xf32> to vector<16x32xf32>
    %8 = arith.truncf %7 : vector<16x32xf32> to vector<16x32xbf16>
    %c0_6 = arith.constant 0 : index
    %c0_7 = arith.constant 0 : index
    %c0_8 = arith.constant 0 : index
    %9 = vector.load %arg4[%c0_6, %c0_7, %c0_8] : memref<1x16x32xf32, #tpu.memory_space<vmem>>, vector<1x16x32xf32>
    %10 = vector.shape_cast %9 : vector<1x16x32xf32> to vector<16x32xf32>
    %11 = arith.truncf %10 : vector<16x32xf32> to vector<16x32xbf16>
    %c0_9 = arith.constant 0 : index
    %c0_10 = arith.constant 0 : index
    %c0_11 = arith.constant 0 : index
    %12 = vector.load %arg5[%c0_9, %c0_10, %c0_11] : memref<1x4x32xbf16, #tpu.memory_space<vmem>>, vector<1x4x32xbf16>
    %13 = vector.shape_cast %12 : vector<1x4x32xbf16> to vector<4x32xbf16>
    %c0_12 = arith.constant 0 : index
    %c0_13 = arith.constant 0 : index
    %c0_14 = arith.constant 0 : index
    %14 = vector.load %arg6[%c0_12, %c0_13, %c0_14] : memref<1x4x32xbf16, #tpu.memory_space<vmem>>, vector<1x4x32xbf16>
    %15 = vector.shape_cast %14 : vector<1x4x32xbf16> to vector<4x32xbf16>
    %c0_15 = arith.constant 0 : index
    %c0_16 = arith.constant 0 : index
    %c0_17 = arith.constant 0 : index
    %16 = vector.load %arg7[%c0_15, %c0_16, %c0_17] : memref<1x4x32xbf16, #tpu.memory_space<vmem>>, vector<1x4x32xbf16>
    %17 = vector.shape_cast %16 : vector<1x4x32xbf16> to vector<4x32xbf16>
    %c0_18 = arith.constant 0 : index
    %c0_19 = arith.constant 0 : index
    %c0_20 = arith.constant 0 : index
    %18 = vector.load %arg8[%c0_18, %c0_19, %c0_20] : memref<1x4x32xbf16, #tpu.memory_space<vmem>>, vector<1x4x32xbf16>
    %19 = vector.shape_cast %18 : vector<1x4x32xbf16> to vector<4x32xbf16>
    %cst = arith.constant dense<0.000000e+00> : vector<8x4xf32>
    %20 = tpu.matmul %5, %13, %cst {dimension_numbers = #tpu.dot_dimension_numbers<[1], [1], [0], [0], [0, 0, 1, 0], [], []>} : vector<8x32xbf16>, vector<4x32xbf16>, vector<8x4xf32> -> vector<8x4xf32>
    %cst_21 = arith.constant dense<0.000000e+00> : vector<16x4xf32>
    %21 = tpu.matmul %8, %15, %cst_21 {dimension_numbers = #tpu.dot_dimension_numbers<[1], [1], [0], [0], [0, 0, 1, 0], [], []>} : vector<16x32xbf16>, vector<4x32xbf16>, vector<16x4xf32> -> vector<16x4xf32>
    %cst_22 = arith.constant dense<0.000000e+00> : vector<16x4xf32>
    %22 = tpu.matmul %11, %17, %cst_22 {dimension_numbers = #tpu.dot_dimension_numbers<[1], [1], [0], [0], [0, 0, 1, 0], [], []>} : vector<16x32xbf16>, vector<4x32xbf16>, vector<16x4xf32> -> vector<16x4xf32>
    %23 = vector.shape_cast %20 : vector<8x4xf32> to vector<1x8x4xf32>
    %24 = arith.truncf %23 : vector<1x8x4xf32> to vector<1x8x4xbf16>
    %25 = vector.shape_cast %21 : vector<16x4xf32> to vector<1x16x4xf32>
    %26 = arith.truncf %25 : vector<1x16x4xf32> to vector<1x16x4xbf16>
    %27 = vector.shape_cast %22 : vector<16x4xf32> to vector<1x16x4xf32>
    %28 = arith.truncf %27 : vector<1x16x4xf32> to vector<1x16x4xbf16>
    "tpu.trace_start"() <{level = 10 : i32, message = "bnd,bmd->bnm"}> : () -> ()
    %cst_23 = arith.constant dense<0.000000e+00> : vector<1x8x16xf32>
    %29 = tpu.matmul %24, %26, %cst_23 {dimension_numbers = #tpu.dot_dimension_numbers<[2], [2], [1], [1], [0, 0, 0, 1, 1, 1], [0], [0]>} : vector<1x8x4xbf16>, vector<1x16x4xbf16>, vector<1x8x16xf32> -> vector<1x8x16xf32>
    "tpu.trace_stop"() : () -> ()
    %cst_24 = arith.constant dense<0xFF800000> : vector<1x8xf32>
    %30 = vector.multi_reduction <maximumf>, %29, %cst_24 [2] : vector<1x8x16xf32> to vector<1x8xf32>
    %31 = vector.shape_cast %30 : vector<1x8xf32> to vector<1x8x1xf32>
    %32 = vector.broadcast %31 : vector<1x8x1xf32> to vector<1x8x16xf32>
    %33 = arith.subf %29, %32 : vector<1x8x16xf32>
    %34 = math.exp %33 : vector<1x8x16xf32>
    %cst_25 = arith.constant dense<0.000000e+00> : vector<1x8xf32>
    %35 = vector.multi_reduction <add>, %34, %cst_25 [2] : vector<1x8x16xf32> to vector<1x8xf32>
    %36 = vector.shape_cast %35 : vector<1x8xf32> to vector<1x8x1xf32>
    %37 = vector.broadcast %36 : vector<1x8x1xf32> to vector<1x8x16xf32>
    %38 = arith.divf %34, %37 : vector<1x8x16xf32>
    %39 = arith.truncf %38 : vector<1x8x16xf32> to vector<1x8x16xbf16>
    "tpu.trace_start"() <{level = 10 : i32, message = "bnm,bmd->bnd"}> : () -> ()
    %cst_26 = arith.constant dense<0.000000e+00> : vector<1x8x4xf32>
    %40 = tpu.matmul %39, %28, %cst_26 {dimension_numbers = #tpu.dot_dimension_numbers<[2], [1], [1], [2], [0, 0, 0, 1, 1, 2], [0], [0]>} : vector<1x8x16xbf16>, vector<1x16x4xbf16>, vector<1x8x4xf32> -> vector<1x8x4xf32>
    "tpu.trace_stop"() : () -> ()
    %41 = vector.shape_cast %40 : vector<1x8x4xf32> to vector<8x4xf32>
    %42 = arith.truncf %41 : vector<8x4xf32> to vector<8x4xbf16>
    %cst_27 = arith.constant dense<0.000000e+00> : vector<8x32xf32>
    %43 = tpu.matmul %42, %19, %cst_27 {dimension_numbers = #tpu.dot_dimension_numbers<[1], [0], [0], [1], [0, 0, 1, 1], [], []>} : vector<8x4xbf16>, vector<4x32xbf16>, vector<8x32xf32> -> vector<8x32xf32>
    %c0_28 = arith.constant 0 : index
    %c0_29 = arith.constant 0 : index
    %c0_30 = arith.constant 0 : index
    %44 = vector.load %arg11[%c0_28, %c0_29, %c0_30] : memref<1x8x32xf32, #tpu.memory_space<vmem>>, vector<1x8x32xf32>
    %45 = vector.shape_cast %43 : vector<8x32xf32> to vector<1x8x32xf32>
    %46 = arith.addf %44, %45 : vector<1x8x32xf32>
    %c0_31 = arith.constant 0 : index
    %c0_32 = arith.constant 0 : index
    %c0_33 = arith.constant 0 : index
    %47 = vector.load %arg11[%c0_31, %c0_32, %c0_33] : memref<1x8x32xf32, #tpu.memory_space<vmem>>, vector<1x8x32xf32>
    tpu.vector_store %arg11[%c0_31, %c0_32, %c0_33], %46 {strides = array<i32>} : memref<1x8x32xf32, #tpu.memory_space<vmem>>, vector<1x8x32xf32>,
    %c7_i32 = arith.constant 7 : i32
    %48 = arith.cmpi eq, %arg1, %c7_i32 : i32
    %49 = arith.extui %48 : i1 to i32
    %c0_i32_34 = arith.constant 0 : i32
    %50 = arith.cmpi ne, %49, %c0_i32_34 : i32
    scf.if %50 {
      %c0_35 = arith.constant 0 : index
      %c0_36 = arith.constant 0 : index
      %c0_37 = arith.constant 0 : index
      %51 = vector.load %arg11[%c0_35, %c0_36, %c0_37] : memref<1x8x32xf32, #tpu.memory_space<vmem>>, vector<1x8x32xf32>
      %c0_38 = arith.constant 0 : index
      %c0_39 = arith.constant 0 : index
      %52 = vector.load %arg9[%c0_38, %c0_39] : memref<1x32xf32, #tpu.memory_space<vmem>>, vector<1x32xf32>
      %53 = vector.shape_cast %52 : vector<1x32xf32> to vector<1x1x32xf32>
      %54 = vector.broadcast %53 : vector<1x1x32xf32> to vector<1x8x32xf32>
      %55 = arith.addf %51, %54 : vector<1x8x32xf32>
      %c0_40 = arith.constant 0 : index
      %c0_41 = arith.constant 0 : index
      %c0_42 = arith.constant 0 : index
      %56 = vector.load %arg10[%c0_40, %c0_41, %c0_42] : memref<1x8x32xf32, #tpu.memory_space<vmem>>, vector<1x8x32xf32>
      tpu.vector_store %arg10[%c0_40, %c0_41, %c0_42], %55 {strides = array<i32>} : memref<1x8x32xf32, #tpu.memory_space<vmem>>, vector<1x8x32xf32>,
    } else {
    }
    return
  }
  func.func @transform_0(%arg0: i32, %arg1: i32) -> (i32, i32, i32) {
    %c0_i32 = arith.constant 0 : i32
    %c0_i32_0 = arith.constant 0 : i32
    %c0_i32_1 = arith.constant 0 : i32
    return %arg0, %c0_i32, %c0_i32_0 : i32, i32, i32
  }
  func.func @transform_1(%arg0: i32, %arg1: i32) -> (i32, i32, i32) {
    %c0_i32 = arith.constant 0 : i32
    %c0_i32_0 = arith.constant 0 : i32
    %c0_i32_1 = arith.constant 0 : i32
    return %arg0, %c0_i32, %c0_i32_0 : i32, i32, i32
  }
  func.func @transform_2(%arg0: i32, %arg1: i32) -> (i32, i32, i32) {
    %c0_i32 = arith.constant 0 : i32
    %c0_i32_0 = arith.constant 0 : i32
    %c0_i32_1 = arith.constant 0 : i32
    return %arg0, %c0_i32, %c0_i32_0 : i32, i32, i32
  }
  func.func @transform_3(%arg0: i32, %arg1: i32) -> (i32, i32, i32) {
    %c0_i32 = arith.constant 0 : i32
    %c0_i32_0 = arith.constant 0 : i32
    %c0_i32_1 = arith.constant 0 : i32
    return %arg1, %c0_i32, %c0_i32_0 : i32, i32, i32
  }
  func.func @transform_4(%arg0: i32, %arg1: i32) -> (i32, i32, i32) {
    %c0_i32 = arith.constant 0 : i32
    %c0_i32_0 = arith.constant 0 : i32
    %c0_i32_1 = arith.constant 0 : i32
    return %arg1, %c0_i32, %c0_i32_0 : i32, i32, i32
  }
  func.func @transform_5(%arg0: i32, %arg1: i32) -> (i32, i32, i32) {
    %c0_i32 = arith.constant 0 : i32
    %c0_i32_0 = arith.constant 0 : i32
    %c0_i32_1 = arith.constant 0 : i32
    return %arg1, %c0_i32, %c0_i32_0 : i32, i32, i32
  }
  func.func @transform_6(%arg0: i32, %arg1: i32) -> (i32, i32, i32) {
    %c0_i32 = arith.constant 0 : i32
    %c0_i32_0 = arith.constant 0 : i32
    %c0_i32_1 = arith.constant 0 : i32
    return %arg1, %c0_i32, %c0_i32_0 : i32, i32, i32
  }
  func.func @transform_7(%arg0: i32, %arg1: i32) -> (i32, i32) {
    %c0_i32 = arith.constant 0 : i32
    %c0_i32_0 = arith.constant 0 : i32
    %c0_i32_1 = arith.constant 0 : i32
    return %c0_i32, %c0_i32_0 : i32, i32
  }
  func.func @transform_8(%arg0: i32, %arg1: i32) -> (i32, i32, i32) {
    %c0_i32 = arith.constant 0 : i32
    %c0_i32_0 = arith.constant 0 : i32
    %c0_i32_1 = arith.constant 0 : i32
    return %arg0, %c0_i32, %c0_i32_0 : i32, i32, i32
  }
}

</mosaic_0001>

<bundles_post_ra>
// kernel: tpu_custom_call.1
= control target key start
LH: loop header
LB: loop body
LE: loop exit
PB: predicated region body
PF: predicated region fallthrough
CT: control target
= control target key end

     0   :  { %s2127_s0 = inlined_call_operand.hbm [shape: f32[2,8,32], index: 0, kind: input, shape index: {}]   ;;  %s2128_s1 = inlined_call_operand.hbm [shape: f32[2,16,32], index: 1, kind: input, shape index: {}]   ;;  %s2129_s2 = inlined_call_operand.hbm [shape: f32[2,16,32], index: 2, kind: input, shape index: {}]   ;;  %s2130_s3 = inlined_call_operand.hbm [shape: bf16[8,4,32], index: 3, kind: input, shape index: {}]   ;;  %s2131_s4 = inlined_call_operand.hbm [shape: bf16[8,4,32], index: 4, kind: input, shape index: {}]   ;;  %s2132_s5 = inlined_call_operand.hbm [shape: bf16[8,4,32], index: 5, kind: input, shape index: {}]   ;;  %s2133_s6 = inlined_call_operand.hbm [shape: bf16[8,4,32], index: 6, kind: input, shape index: {}]   ;;  %s2134_s7 = inlined_call_operand.vmem [shape: f32[1,32], index: 7, kind: input, shape index: {}]   ;;  %s2135_s8 = inlined_call_operand.hbm [shape: f32[2,8,32], index: 8, kind: output, shape index: {}]  }
   0x1   :  { %2160 = sst [smem:[#allocation35_spill]] %s2128_s1 }
   0x2   :  { %2161 = sst [smem:[#allocation36_spill]] %s2129_s2 }
   0x3   :  { %2162 = sst [smem:[#allocation37_spill]] %s2130_s3 }
   0x4   :  { %2163 = sst [smem:[#allocation38_spill]] %s2132_s5 }
   0x5   :  { %2164 = sst [smem:[#allocation39_spill]] %s2133_s6 }
   0x6   :  { %2165 = sst [smem:[#allocation40_spill]] %s2134_s7 }
   0x7   :  { %2166 = sst [smem:[#allocation41_spill]] %s2135_s8 }
   0x8   :  { %13 = vsyncpa [#allocation4], 0 }
   0x9   :  { %15 = vsyncpa [#allocation4 + $0x1], 0 }
   0xa   :  { %16 = vsyncpa [#allocation7], 0 }
   0xb   :  { %18 = vsyncpa [#allocation7 + $0x1], 0 }
   0xc   :  { %19 = vsyncpa [#allocation10], 0 }
   0xd   :  { %21 = vsyncpa [#allocation10 + $0x1], 0 }
   0xe   :  { %22 = vsyncpa [#allocation13], 0 }
   0xf   :  { %24 = vsyncpa [#allocation13 + $0x1], 0 }
  0x10   :  { %25 = vsyncpa [#allocation5], 0 }
  0x11   :  { %27 = vsyncpa [#allocation5 + $0x1], 0  ;;  %s1728_s27 = smov 0   ;;  %s1730_s28 = smov 0  }
  0x12   :  { %s1732_s29 = smov 0   ;;  %s1734_s30 = smov 0  }
  0x13   :  { %s1736_s9 = smov 0   ;;  %s1738_s10 = smov 0  }
  0x14   :  { %s1740_s11 = smov 0   ;;  %s1742_s12 = smov 0  }
  0x15   :  { %s1744_s13 = smov 0   ;;  %s1746_s14 = smov 0  }
  0x16   :  { %s1748_s15 = smov 0  }
  0x17 LB: > { %2167 = sst [smem:[#allocation21_spill]] %s1636_s29  ;;  %s1784_s16 = sadd.s32 4294967295, %s1668_s15   ;;  %s1668_s15 = sphi %s1748_s15, %s33_s15   ;;  %s1664_s14 = sphi %s1746_s14, %s2228_s14   ;;  %s1660_s13 = sphi %s1744_s13, %s2221_s13   ;;  %s1656_s12 = sphi %s1742_s12, %s2227_s12   ;;  %s1652_s11 = sphi %s1740_s11, %s2220_s11   ;;  %s1648_s10 = sphi %s1738_s10, %s2219_s10   ;;  %s1644_s9 = sphi %s1736_s9, %s2226_s9   ;;  %s1640_s30 = sphi %s1734_s30, %s2225_s30   ;;  %s1636_s29 = sphi %s1732_s29, %s2217_s29   ;;  %s1632_s28 = sphi %s1730_s28, %s2224_s28   ;;  %s1628_s27 = sphi %s1728_s27, %s2223_s27  }
  0x18   : > { %2168 = sst [smem:[#allocation22_spill]] %s1640_s30  ;;  %s1108_s17 = sadd.s32 4294967294, %s1668_s15  }
  0x19   : > { %2169 = sst [smem:[#allocation23_spill]] %s1648_s10  ;;  %p59_p0 = scmp.ne.s32.totalorder %s1648_s10, %s1644_s9 }
  0x1a   : > { %2170 = sst [smem:[#allocation24_spill]] %s1652_s11  ;;  %p60_p1 = scmp.eq.s32.totalorder %s1668_s15, 0 }
  0x1b   : > { %2171 = sst [smem:[#allocation25_spill]] %s1656_s12  ;;  %p65_p2 = scmp.ne.s32.totalorder %s1644_s9, %s1640_s30 }
  0x1c   : > { %2172 = sst [smem:[#allocation26_spill]] %s1660_s13  ;;  %p266_p3 = scmp.eq.s32.totalorder %s1784_s16, 15 }
  0x1d   : > { %2173 = sst [smem:[#allocation27_spill]] %s1668_s15  ;;  %p272_p4 = scmp.eq.s32.totalorder %s1108_s17, 15 }
  0x1e   : > { %p61_p5 = por %p60_p1, %p59_p0  ;;  %p1796_p6 = por %p266_p3, %p59_p0 }
  0x1f   : > { %p1803_p7 = por %p272_p4, %p65_p2  ;;  %p2143_p8 = scmp.lt.s32.totalorder %s1668_s15, 16 }
  0x20   : > { %s2174_s19 = scalar_select %p1796_p6, 1, 0 }
  0x21   : > { %s2176_s20 = scalar_select %p1803_p7, 1, 0 }
  0x22   : > { %2175 = sst [smem:[#allocation28_spill]] %s2174_s19  ;;  %s1809_s21 = sand.u32 1, %s1648_s10  }
  0x23   : > { %2177 = sst [smem:[#allocation29_spill]] %s2176_s20  ;;  %s1812_s22 = sand.u32 1, %s1668_s15  }
  0x24   : > { %s1113_s23 = sshll.u32 %s1809_s21, 4  ;;  %p1817_p9 = pnand %p2143_p8, %p61_p5 }
  0x25   : > { %s1149_s25 = sshll.u32 %s1664_s14, 8  ;;  %s2179_s1 = sld [smem:[#allocation35_spill]] }
  0x26   : > { %s317_s20 = scalar_lea.vmem [#allocation6], %s1113_s23  ;;  %s2142_s19 = scalar_lea.sflag [#allocation7], %s1812_s22 }
  0x27   : > { %s324_s8 = sshll.u32 %s317_s20, 4  ;;  %p2141_p10 = pneg %p1817_p9  ;;  %s325_s8 = int_to_ptr.vmem [resolvable:$true] %s324_s8 }
  0x28   : > { %s1353_s12 = scalar_lea.vmem %s325_s8, 256  ;;  %s1670_s7 = smov [#allocation6]  }
  0x29   : > { %p1354_p11 = scmp.ne.s32.totalorder %s325_s8, %s1353_s12  ;;  %s1358_s11 = sshll.u32 %s1670_s7, 4  ;;  %s1359_s11 = int_to_ptr.vmem [resolvable:$false] %s1358_s11 }
  0x2a   : > { %s1360_s6 = scalar_lea.vmem %s1359_s11, 512  ;;  %p1361_p0 = scmp.lt.s32.totalorder %s325_s8, %s1359_s11 }
  0x2b   : > { %s323_s18 = scalar_lea.hbm %s2179_s1, %s1149_s25  ;;  %p1356_p12 = pnand %p1354_p11, %p2141_p10 }
  0x2c   : > { %p1362_p3 = scmp.lt.s32.totalorder %s1360_s6, %s1353_s12 }
  0x2d   : > { %p1357_p13 = pneg %p1356_p12 }
  0x2e   : > { %p1363_p4 = por %p1362_p3, %p1361_p0 }
  0x30   : > { %p1364_p5 = pnand %p1363_p4, %p1357_p13 }
  0x32   : > { %1367 = shalt.err (!%p1364_p5)
}
  0x33   : > { %s2144_s20 = smov 128   ;;  %s2145_s26 = smov 8  }
  0x34   : > { %1221 = dma.hbm_to_vmem [thread:$0]  (!%p1817_p9), %s323_s18, 256, %s325_s8, %s2142_s19, %s2144_s20, %s2144_s20, %s2145_s26  }
  0x35   : > { %s2180_s2 = sld [smem:[#allocation36_spill]]  ;;  %s338_s12 = scalar_lea.vmem [#allocation8], %s1113_s23 }
  0x36   : > { %s345_s17 = sshll.u32 %s338_s12, 4  ;;  %p1127_p11 = scmp.ge.s32.totalorder %s1668_s15, 1  ;;  %s1848_s17 = int_to_ptr.vmem [resolvable:$true] %s345_s17 }
  0x37   : > { %p425_p12 = scmp.lt.s32.totalorder %s1668_s15, 17  ;;  %s42_s18 = sadd.s32 1, %s1660_s13 }
  0x38   : > { %p43_p0 = scmp.ge.s32.totalorder %s42_s18, 8  ;;  %p66_p3 = scmp.eq.s32.totalorder %s1784_s16, 0 }
  0x39   : > { %p1851_p13 = pnand %p1127_p11, %p425_p12  ;;  %s130_s23 = sadd.s32 1, %s1636_s29 }
  0x3a   : > { %s2230_s18 = smov (%p43_p0, %s42_s18), 0  ;;  %p1867_p4 = por %p66_p3, %p65_p2 }
  0x3b   : > { %s1843_s11 = scalar_lea.hbm %s2180_s2, %s1149_s25  ;;  %s45_s25 = sadd.s32 1, %s1664_s14 }
  0x3c   : > { %2182 = sst [smem:[#allocation30_spill]] %s2230_s18  ;;  %s2232_s25 = smov (!%p43_p0, %s45_s25), %s1664_s14 }
  0x3d   : > { %s127_s7 = ssub.s32 %s1660_s13, %s2230_s18  ;;  %p47_p5 = scmp.ge.s32.totalorder %s2232_s25, 2 }
  0x3e   : > { %p128_p11 = scmp.eq.s32.totalorder %s127_s7, 0  ;;  %p137_p12 = scmp.ne.s32.totalorder %s1636_s29, %s1632_s28 }
  0x3f   : > { %p143_p10 = scmp.ne.s32.totalorder %s1632_s28, %s1628_s27  ;;  %s2234_s25 = smov (%p47_p5, %s2232_s25), 0 }
  0x40   : > { %2184 = sst [smem:[#allocation31_spill]] %s2234_s25  ;;  %s49_s19 = ssub.s32 %s1664_s14, %s2234_s25 }
  0x41   : > { %s1880_s12 = scalar_select %p128_p11, %s1636_s29, %s130_s23  }
  0x42   : > { %p139_p0 = por %p137_p12, %p60_p1  ;;  %p50_p8 = scmp.eq.s32.totalorder %s49_s19, 0 }
  0x43   : > { %2185 = sst [smem:[#allocation32_spill]] %s1880_s12  ;;  %p1888_p2 = por %p143_p10, %p66_p3 }
  0x44   : > { %s357_s26 = sand.u32 1, %s1636_s29   ;;  %s2188_s7 = sadd.s32 1, %s1648_s10 }
  0x45   : > { %s2186_s20 = scalar_select %p1888_p2, 1, 0 }
  0x46   : > { %s1896_s1 = scalar_select %p50_p8, %s1648_s10, %s2188_s7  }
  0x47   : > { %2187 = sst [smem:[#allocation33_spill]] %s2186_s20  ;;  %s1898_s27 = sshll.u32 %s357_s26, 1 }
  0x48   : > { %2189 = sst [smem:[#allocation34_spill]] %s1896_s1  ;;  %s1901_s2 = sshll.u32 %s1660_s13, 5 }
  0x49   : > { %s2190_s3 = sld [smem:[#allocation37_spill]]  ;;  %s359_s19 = scalar_lea.vmem [#allocation9], %s1898_s27 }
  0x4a   : > { %s366_s12 = sshll.u32 %s359_s19, 4  ;;  %p2191_p1 = scmp.lt.s32.totalorder %s1668_s15, 16  ;;  %s367_s12 = int_to_ptr.vmem [resolvable:$true] %s366_s12 }
  0x4b   : > { %s2154_s26 = scalar_lea.sflag [#allocation10], %s1812_s22  ;;  %s1381_s7 = scalar_lea.vmem %s367_s12, 32 }
  0x4c   : > { %p1910_p10 = pnand %p2191_p1, %p139_p0  ;;  %p1382_p3 = scmp.ne.s32.totalorder %s367_s12, %s1381_s7 }
  0x4d   : > { %s1673_s25 = smov [#allocation9]  }
  0x4e   : > { %p2158_p8 = pneg %p1910_p10  ;;  %s1386_s23 = sshll.u32 %s1673_s25, 4  ;;  %s1387_s23 = int_to_ptr.vmem [resolvable:$false] %s1386_s23 }
  0x4f   : > { %s364_s18 = scalar_lea.hbm %s2190_s3, %s1901_s2  ;;  %s1388_s19 = scalar_lea.vmem %s1387_s23, 64 }
  0x50   : > { %p1384_p5 = pnand %p1382_p3, %p2158_p8  ;;  %p1389_p12 = scmp.lt.s32.totalorder %s367_s12, %s1387_s23 }
  0x51   : > { %p1390_p0 = scmp.lt.s32.totalorder %s1388_s19, %s1381_s7 }
  0x52   : > { %p1385_p11 = pneg %p1384_p5 }
  0x53   : > { %p1391_p1 = por %p1390_p0, %p1389_p12 }
  0x55   : > { %p1392_p7 = pnand %p1391_p1, %p1385_p11 }
  0x57   : > { %1395 = shalt.err (!%p1392_p7)
}
  0x58   : > { %1227 = dma.hbm_to_vmem [thread:$0]  (!%p1910_p10), %s364_s18, 32, %s367_s12, %s2154_s26  }
  0x59   : > { %s2193_s5 = sld [smem:[#allocation38_spill]]  ;;  %s395_s1 = scalar_lea.vmem [#allocation12], %s1898_s27 }
  0x5a   : > { %s402_s10 = sshll.u32 %s395_s1, 4  ;;  %s2157_s7 = scalar_lea.sflag [#allocation13], %s1812_s22  ;;  %s403_s10 = int_to_ptr.vmem [resolvable:$true] %s402_s10 }
  0x5b   : > { %s1409_s23 = scalar_lea.vmem %s403_s10, 32  ;;  %s1674_s19 = smov [#allocation12]  }
  0x5c   : > { %p1410_p3 = scmp.ne.s32.totalorder %s403_s10, %s1409_s23  ;;  %s1414_s29 = sshll.u32 %s1674_s19, 4  ;;  %s1415_s29 = int_to_ptr.vmem [resolvable:$false] %s1414_s29 }
  0x5d   : > { %s1416_s15 = scalar_lea.vmem %s1415_s29, 64  ;;  %p1417_p11 = scmp.lt.s32.totalorder %s403_s10, %s1415_s29 }
  0x5e   : > { %p1412_p7 = pnand %p1410_p3, %p2158_p8  ;;  %p1418_p12 = scmp.lt.s32.totalorder %s1416_s15, %s1409_s23 }
  0x5f   : > { %s400_s25 = scalar_lea.hbm %s2193_s5, %s1901_s2 }
  0x60   : > { %p1413_p5 = pneg %p1412_p7  ;;  %p1419_p0 = por %p1418_p12, %p1417_p11 }
  0x62   : > { %p1420_p1 = pnand %p1419_p0, %p1413_p5 }
  0x64   : > { %1423 = shalt.err (!%p1420_p1)
}
  0x65   : > { %1233 = dma.hbm_to_vmem [thread:$0]  (!%p1910_p10), %s400_s25, 32, %s403_s10, %s2157_s7  }
  0x66   : > { %s1111_s1 = sshll.u32 %s1809_s21, 3  ;;  %s1112_s3 = sshll.u32 %s1664_s14, 7 }
  0x67   : > { %s304_s29 = scalar_lea.hbm %s2127_s0, %s1112_s3  ;;  %s299_s15 = scalar_lea.vmem [#allocation3], %s1111_s1 }
  0x68   : > { %s306_s12 = sshll.u32 %s299_s15, 4  ;;  %s382_s26 = scalar_lea.hbm %s2131_s4, %s1901_s2  ;;  %s307_s12 = int_to_ptr.vmem [resolvable:$true] %s306_s12 }
  0x69   : > { %s296_s5 = scalar_lea.sflag [#allocation4], %s1809_s21  ;;  %s1437_s20 = scalar_lea.vmem %s307_s12, 128 }
  0x6a   : > { %p1438_p3 = scmp.ne.s32.totalorder %s307_s12, %s1437_s20  ;;  %p2194_p7 = pneg %p1817_p9 }
  0x6b   : > { %s1675_s10 = smov [#allocation3]  }
  0x6c   : > { %p1440_p5 = pnand %p1438_p3, %p2194_p7  ;;  %s1442_s25 = sshll.u32 %s1675_s10, 4  ;;  %s1443_s25 = int_to_ptr.vmem [resolvable:$false] %s1442_s25 }
  0x6d   : > { %s1444_s7 = scalar_lea.vmem %s1443_s25, 256  ;;  %p1445_p12 = scmp.lt.s32.totalorder %s307_s12, %s1443_s25 }
  0x6e   : > { %p1441_p11 = pneg %p1440_p5  ;;  %p1446_p0 = scmp.lt.s32.totalorder %s1444_s7, %s1437_s20 }
  0x70   : > { %p1447_p1 = por %p1446_p0, %p1445_p12 }
  0x72   : > { %p1448_p8 = pnand %p1447_p1, %p1441_p11 }
  0x74   : > { %1451 = shalt.err (!%p1448_p8)
}
  0x75   : > { %1218 = dma.hbm_to_vmem [thread:$0]  (!%p1817_p9), %s304_s29, 128, %s307_s12, %s296_s5  }
  0x76   : > { %s1465_s21 = scalar_lea.vmem %s1848_s17, 256  ;;  %p2195_p3 = pmov %p2194_p7 }
  0x77   : > { %p1466_p6 = scmp.ne.s32.totalorder %s1848_s17, %s1465_s21  ;;  %s1676_s1 = smov [#allocation8]  }
  0x78   : > { %s1470_s3 = sshll.u32 %s1676_s1, 4  ;;  %s1471_s3 = int_to_ptr.vmem [resolvable:$false] %s1470_s3 }
  0x79   : > { %p1468_p7 = pnand %p1466_p6, %p2195_p3  ;;  %s1472_s20 = scalar_lea.vmem %s1471_s3, 512 }
  0x7a   : > { %p1473_p12 = scmp.lt.s32.totalorder %s1848_s17, %s1471_s3  ;;  %p1474_p11 = scmp.lt.s32.totalorder %s1472_s20, %s1465_s21 }
  0x7b   : > { %p1469_p5 = pneg %p1468_p7 }
  0x7c   : > { %p1475_p8 = por %p1474_p11, %p1473_p12 }
  0x7e   : > { %p1476_p0 = pnand %p1475_p8, %p1469_p5 }
  0x80   : > { %1479 = shalt.err (!%p1476_p0)
}
  0x81   : > { %s2196_s7 = smov 8   ;;  %s2197_s13 = smov 128  }
  0x82   : > { %s2198_s5 = scalar_lea.sflag [#allocation7], %s1812_s22  ;;  %s377_s18 = scalar_lea.vmem [#allocation11], %s1898_s27 }
  0x83   : > { %1224 = dma.hbm_to_vmem [thread:$0]  (!%p1817_p9), %s1843_s11, 256, %s1848_s17, %s2198_s5, %s2197_s13, %s2197_s13, %s2196_s7  }
  0x84   : > { %s384_s29 = sshll.u32 %s377_s18, 4  ;;  %s2199_s23 = sld [smem:[#allocation39_spill]]  ;;  %s385_s29 = int_to_ptr.vmem [resolvable:$true] %s384_s29 }
  0x85   : > { %s1493_s10 = scalar_lea.vmem %s385_s29, 32  ;;  %p2200_p1 = pneg %p1910_p10 }
  0x86   : > { %p1494_p6 = scmp.ne.s32.totalorder %s385_s29, %s1493_s10  ;;  %s1677_s24 = smov [#allocation11]  }
  0x87   : > { %s1498_s25 = sshll.u32 %s1677_s24, 4  ;;  %s1499_s25 = int_to_ptr.vmem [resolvable:$false] %s1498_s25 }
  0x88   : > { %p1496_p3 = pnand %p1494_p6, %p2200_p1  ;;  %s1500_s21 = scalar_lea.vmem %s1499_s25, 64 }
  0x89   : > { %p1501_p5 = scmp.lt.s32.totalorder %s385_s29, %s1499_s25  ;;  %p1502_p12 = scmp.lt.s32.totalorder %s1500_s21, %s1493_s10 }
  0x8a   : > { %s418_s19 = scalar_lea.hbm %s2199_s23, %s1901_s2  ;;  %p1497_p7 = pneg %p1496_p3 }
  0x8b   : > { %p1503_p9 = por %p1502_p12, %p1501_p5 }
  0x8d   : > { %p1504_p11 = pnand %p1503_p9, %p1497_p7 }
  0x8f   : > { %1507 = shalt.err (!%p1504_p11)
}
  0x90   : > { %s2201_s11 = scalar_lea.sflag [#allocation10], %s1812_s22  ;;  %s413_s3 = scalar_lea.vmem [#allocation14], %s1898_s27 }
  0x91   : > { %1230 = dma.hbm_to_vmem [thread:$0]  (!%p1910_p10), %s382_s26, 32, %s385_s29, %s2201_s11  }
  0x92   : > { %s420_s20 = sshll.u32 %s413_s3, 4  ;;  %p2202_p0 = pmov %p2200_p1  ;;  %s421_s20 = int_to_ptr.vmem [resolvable:$true] %s420_s20 }
  0x93   : > { %s1521_s7 = scalar_lea.vmem %s421_s20, 32  ;;  %s1678_s13 = smov [#allocation14]  }
  0x94   : > { %p1522_p8 = scmp.ne.s32.totalorder %s421_s20, %s1521_s7  ;;  %s1526_s5 = sshll.u32 %s1678_s13, 4  ;;  %s1527_s5 = int_to_ptr.vmem [resolvable:$false] %s1526_s5 }
  0x95   : > { %s1528_s18 = scalar_lea.vmem %s1527_s5, 64  ;;  %p1529_p3 = scmp.lt.s32.totalorder %s421_s20, %s1527_s5 }
  0x96   : > { %p1524_p6 = pnand %p1522_p8, %p2202_p0  ;;  %p1530_p7 = scmp.lt.s32.totalorder %s1528_s18, %s1521_s7 }
  0x98   : > { %p1525_p1 = pneg %p1524_p6  ;;  %p1531_p5 = por %p1530_p7, %p1529_p3 }
  0x9a   : > { %p1532_p12 = pnand %p1531_p5, %p1525_p1 }
  0x9c   : > { %1535 = shalt.err (!%p1532_p12)
}
  0x9d   : > { %s2203_s27 = scalar_lea.sflag [#allocation13], %s1812_s22  ;;  %429 = sbr.rel (%p1851_p13) target bundleno = 1340 (0x53c), region = 52 }
  0x9e   : > { %1236 = dma.hbm_to_vmem [thread:$0]  (!%p1910_p10), %s418_s19, 32, %s421_s20, %s2203_s27  }
  0x9f   : > { %s2000_s15 = sand.u32 (!%p1851_p13), 1, %s1644_s9  }
  0xa0   : > { %s1128_s12 = sshll.u32 (!%p1851_p13), %s2000_s15, 3  ;;  %s432_s10 = scalar_lea.sflag (!%p1851_p13), [#allocation4], %s2000_s15 }
  0xa1   : > { %s2004_s30 = scalar_lea.vmem (!%p1851_p13), [#allocation3], %s1128_s12 }
  0xa2   : > { %1607 = dma.done.wait (%p1867_p4), %s432_s10, 128  }
  0xa3   : > { %1609 = vsyncadd (%p1867_p4), %s432_s10, 4294967168  ;;  %s440_s2 = sand.u32 1, %s1784_s16   ;;  %s1129_s22 = sshll.u32 %s2000_s15, 4 }
  0xa4   : > { %s441_s8 = scalar_lea.sflag [#allocation7], %s440_s2  ;;  %s2012_s19 = scalar_lea.vmem [#allocation6], %s1129_s22 }
  0xa5   : > { %1611 = dma.done.wait (%p1867_p4), %s441_s8, 512  }
  0xa6   : > { %1613 = vsyncadd (%p1867_p4), %s441_s8, 4294966784  ;;  %s460_s25 = sand.u32 1, %s1632_s28   ;;  %s2021_s11 = scalar_lea.vmem [#allocation8], %s1129_s22 }
  0xa7   : > { %s2019_s21 = sshll.u32 %s460_s25, 1  ;;  %s459_s17 = scalar_lea.sflag [#allocation10], %s440_s2 }
  0xa8   : > { %s462_s1 = scalar_lea.vmem [#allocation9], %s2019_s21 }
  0xa9   : > { %1615 = dma.done.wait (%p1888_p2), %s459_s17, 64  }
  0xaa   : > { %1617 = vsyncadd (%p1888_p2), %s459_s17, 4294967232  ;;  %s471_s16 = scalar_lea.vmem [#allocation11], %s2019_s21  ;;  %s477_s6 = scalar_lea.sflag [#allocation13], %s440_s2 }
  0xab   : > { %s480_s3 = scalar_lea.vmem [#allocation12], %s2019_s21 }
  0xac   : > { %1619 = dma.done.wait (%p1888_p2), %s477_s6, 64  }
  0xad   : > { %1621 = vsyncadd (%p1888_p2), %s477_s6, 4294967232  ;;  %s489_s20 = scalar_lea.vmem [#allocation14], %s2019_s21  ;;  %s2035_s7 = scalar_lea.vmem [#allocation15], %s1128_s12 }
  0xae   : > { %s2205_s13 = sld [smem:[#allocation24_spill]] }
  0xb4   : > { %p1136_p13 = scmp.ne.s32.totalorder %s2205_s13, 0 }
  0xb6   : > { %556 = sbr.rel (%p1136_p13) target bundleno = 189 (0xbd), region = 84 }
  0xbb   : > { %vm557_vm0 = vcmask 261120   ;;  %v1679_v0 = vmov 0.0  }
  0xbc   : > { %558 = vst.msk [vmem:[#allocation2] sm:$0xff] %vm557_vm0, %v1679_v0 }
  0xbd PF: > { %v568_v1 = vld [vmem:[%s471_s16] sm:$0x3]  ;;  %vm571_vm1 = vcmask 261120   ;;  %v1680_v2 = vmov 0.0   ;;  %v567_v4 = vld [vmem:[%s462_s1] sm:$0x3] }
  0xbe   : > { %1169 = vmatprep.subr.bf16.mxu1 %v1680_v2  ;;  %v622_v3 = vsel %vm571_vm1, %v568_v1, 0  ;;  %1163 = vmatprep.subr.bf16.mxu0 %v1680_v2  ;;  %vm1681_vm2 = vmmov 0   ;;  %v576_v5 = vsel %vm571_vm1, %v567_v4, 0  ;;  %v561_v6 = vld [vmem:[%s2012_s19] sm:$0xff]  ;;  %v562_v7 = vld [vmem:[%s2012_s19 + $0x8] sm:$0xff]  ;;  %vm715_vm3 = vcmask 31744  }
  0xbf   : > { %1170 = vmatpush3.bf16.xpose.msra.mxu1 %v622_v3  ;;  %1171 = vmatprep.mubr.msk.bf16.mxu1 %vm1681_vm2, %v1680_v2  ;;  %v559_v8 = vld [vmem:[%s2004_s30] sm:$0xff]  ;;  %v563_v9 = vpack.c.bf16 %v562_v7, %v561_v6  ;;  %v569_v22 = vld [vmem:[%s480_s3] sm:$0x3]  ;;  %v564_v24 = vld [vmem:[%s2021_s11] sm:$0xff]  ;;  %vm762_vm4 = vcmask 130048   ;;  %vm822_vm5 = vcmask 1041408  }
  0xc0   : > { %1164 = vmatpush3.bf16.xpose.msra.mxu0 %v576_v5  ;;  %1165 = vmatprep.mubr.msk.bf16.mxu0 %vm1681_vm2, %v1680_v2  ;;  %v560_v10 = vpack.c.bf16 %v559_v8, %v559_v8  ;;  %v669_v23 = vsel %vm571_vm1, %v569_v22, 0  ;;  %v565_v25 = vld [vmem:[%s2021_s11 + $0x8] sm:$0xff]  ;;  %s2206_s5 = sld [smem:[#allocation24_spill]] }
  0xc1   : > { %1181 = vmatprep.subr.bf16.mxu1 %v1680_v2  ;;  %1175 = vmatprep.subr.bf16.mxu0 %v1680_v2  ;;  %v566_v26 = vpack.c.bf16 %v565_v25, %v564_v24  ;;  %v570_v42 = vld [vmem:[%s489_s20] sm:$0x3] }
  0xc2   : > { %v824_v43 = vsel %vm822_vm5, %v570_v42, 0 }
  0xc3   : > { %v866_v53 = vld [vmem:[#allocation2] sm:$0xff] }
  0xc6   : > { %1172 = vmatmul.mubr.msk.bf16.vlgmr.msra.gmra.mxu1 %vm571_vm1, %v563_v9  ;;  %p1143_p4 = scmp.ne.s32.totalorder %s2206_s5, 7 }
  0xc7   : > { %1166 = vmatmul.mubr.msk.bf16.vlgmr.msra.gmra.mxu0 %vm571_vm1, %v560_v10  ;;  %1183 = vmatprep.mubr.msk.bf16.mxu1 %vm1681_vm2, %v1680_v2  ;;  %s2207_s26 = sld [smem:[#allocation40_spill]] (!%p1143_p4) }
  0xc8   : > { %1177 = vmatprep.mubr.msk.bf16.mxu0 %vm1681_vm2, %v1680_v2  ;;  %1176 = vmatpush3.bf16.xpose.msra.mxu0 %v669_v23 }
  0xc9   : > { %1187 = vmatprep.subr.bf16.mxu0 %v1680_v2 }
  0xcf   : > { %1178 = vmatmul.mubr.msk.bf16.vlgmr.msra.gmra.mxu0 %vm571_vm1, %v566_v26 }
  0xd0   : > { %1189 = vmatprep.mubr.msk.bf16.mxu0 %vm1681_vm2, %v1680_v2 }
 0x186   : > { %v658_v11 = vpop.f32.mrf.mxu1 }
 0x187   : > { %v612_v12 = vpop.f32.mrf.mxu0 }
 0x188   : > { %v1173_v13 = vpop.f32.mrf.mxu1  ;;  %v712_v21 = vpack.c.bf16 %v612_v12, %v612_v12 }
 0x189   : > { %v1167_v14 = vpop.f32.mrf.mxu0 }
 0x18a   : > { %v661_v15 = vpop.f32.mrf.mxu1 }
 0x18b   : > { %v713_v16 = vpack.c.bf16 %v661_v15, %v658_v11  ;;  %v615_v17 = vpop.f32.mrf.mxu0 }
 0x18c   : > { %v1174_v18 = vpop.f32.mrf.mxu1 }
 0x18d   : > { %v720_v19 = vsel %vm715_vm3, %v713_v16, 0  ;;  %v1168_v20 = vpop.f32.mrf.mxu0 }
 0x18e   : > { %1182 = vmatpush3.bf16.xpose.msra.mxu1 %v720_v19 }
 0x18f   : > { %1193 = vmatprep.subr.bf16.mxu1 %v1680_v2  ;;  %v705_v32 = vpop.f32.mrf.mxu0 }
 0x191   : > { %v1179_v33 = vpop.f32.mrf.mxu0 }
 0x193   : > { %v708_v39 = vpop.f32.mrf.mxu0 }
 0x194   : > { %v714_v40 = vpack.c.bf16 %v708_v39, %v705_v32 }
 0x195   : > { %1184 = vmatmul.mubr.msk.bf16.vlgmr.msra.gmra.mxu1 %vm715_vm3, %v712_v21  ;;  %v1180_v41 = vpop.f32.mrf.mxu0 }
 0x196   : > { %1195 = vmatprep.mubr.msk.bf16.mxu1 %vm1681_vm2, %v1680_v2  ;;  %1188 = vmatpush3.bf16.msra.mxu0 %v714_v40 }
 0x197   : > { %1194 = vmatpush3.bf16.msra.mxu1 %v824_v43 }
 0x255   : > { %v756_v27 = vpop.f32.mrf.mxu1 }
 0x256   : > { %v763_v28 = vsel %vm762_vm4, %v756_v27, -inf }
 0x257   : > { %764 = vmax.xlane.f32.xlu0 %v763_v28  ;;  %v1185_v29 = vpop.f32.mrf.mxu1 }
 0x259   : > { %v759_v30 = vpop.f32.mrf.mxu1 }
 0x25b   : > { %v1186_v31 = vpop.f32.mrf.mxu1 }
 0x2e0   : > { %v765_v34 = vpop.xlane.xlu0 %764 }
 0x2e1   : > { %v766_v35 = vsub.f32 %v756_v27, %v765_v34 }
 0x2e3   : > { %v767_v36 = vmul.f32 1.442695, %v766_v35 }
 0x2e5   : > { %1336 = vpow2.f32 %v767_v36 }
 0x2f2   : > { %v1337_v37 = vpop.eup %1336 }
 0x2f3   : > { %v769_v38 = vsel %vm762_vm4, %v1337_v37, 0.0 }
 0x2f4   : > { %770 = vadd.xlane.f32.xlu0 %v769_v38 }
 0x37d   : > { %v771_v44 = vpop.xlane.xlu0 %770 }
 0x37e   : > { %1338 = vrcp.f32 %v771_v44 }
 0x38b   : > { %v1339_v45 = vpop.eup %1338 }
 0x38c   : > { %v773_v46 = vmul.f32 %v1339_v45, %v1337_v37 }
 0x38e   : > { %v774_v47 = vpack.c.bf16 %v773_v46, %v773_v46 }
 0x390   : > { %1190 = vmatmul.mubr.msk.bf16.vlgmr.msra.gmra.mxu0 %vm762_vm4, %v774_v47 }
 0x450   : > { %v812_v48 = vpop.f32.mrf.mxu0 }
 0x451   : > { %v818_v49 = vpack.c.bf16 %v812_v48, %v812_v48 }
 0x452   : > { %v1191_v50 = vpop.f32.mrf.mxu0 }
 0x453   : > { %1196 = vmatmul.mubr.msk.bf16.vlgmr.msra.gmra.mxu1 %vm715_vm3, %v818_v49 }
 0x454   : > { %v815_v51 = vpop.f32.mrf.mxu0 }
 0x456   : > { %v1192_v52 = vpop.f32.mrf.mxu0 }
 0x513   : > { %v860_v54 = vpop.f32.mrf.mxu1 }
 0x514   : > { %v867_v55 = vadd.f32 %v866_v53, %v860_v54 }
 0x515   : > { %v1197_v56 = vpop.f32.mrf.mxu1  ;;  %872 = sbr.rel (%p1143_p4) target bundleno = 1313 (0x521), region = 88 }
 0x516   : > { %868 = vst.msk [vmem:[#allocation2] sm:$0xff] %vm571_vm1, %v867_v55 }
 0x517   : > { %v863_v57 = vpop.f32.mrf.mxu1 }
 0x519   : > { %v1198_v58 = vpop.f32.mrf.mxu1 }
 0x51a   : > { %v1144_v60 = vld [vmem:[%s2207_s26] ss:$0 sm:$0xff] }
 0x51d   : > { %v873_v59 = vld [vmem:[#allocation2] sm:$0xff] }
 0x51e   : > { %v881_v61 = vadd.f32 %v1144_v60, %v873_v59 }
 0x520   : > { %882 = vst.msk [vmem:[%s2035_s7] sm:$0xff] %vm571_vm1, %v881_v61 }
 0x521 PF: > { %s2208_s29 = sld [smem:[#allocation25_spill]]  ;;  %s897_s19 = sshll.u32 %s2035_s7, 4  ;;  %s898_s19 = int_to_ptr.vmem [resolvable:$true] %s897_s19 }
 0x522   : > { %s2209_s12 = sld [smem:[#allocation28_spill]]  ;;  %s884_s24 = scalar_lea.sflag [#allocation5], %s2000_s15 }
 0x523   : > { %s2210_s22 = sld [smem:[#allocation41_spill]]  ;;  %s1536_s25 = scalar_lea.vmem %s898_s19, 128 }
 0x524   : > { %p1537_p2 = scmp.ne.s32.totalorder %s898_s19, %s1536_s25  ;;  %s1682_s21 = smov [#allocation15]  }
 0x525   : > { %s1540_s11 = sshll.u32 %s1682_s21, 4  ;;  %s1541_s11 = int_to_ptr.vmem [resolvable:$false] %s1540_s11 }
 0x526   : > { %s1542_s17 = scalar_lea.vmem %s1541_s11, 256  ;;  %p1543_p8 = scmp.lt.s32.totalorder %s898_s19, %s1541_s11 }
 0x527   : > { %s1146_s10 = sshll.u32 %s2208_s29, 7  ;;  %p1544_p0 = scmp.lt.s32.totalorder %s1542_s17, %s1536_s25 }
 0x528   : > { %p2211_p10 = scmp.ne.s32.totalorder %s2209_s12, 0 }
 0x529   : > { %s895_s8 = scalar_lea.hbm %s2210_s22, %s1146_s10  ;;  %p1545_p6 = por %p1544_p0, %p1543_p8 }
 0x52a   : > { %p1538_p9 = pnand %p1537_p2, %p2211_p10 }
 0x52c   : > { %p1539_p11 = pneg %p1538_p9 }
 0x52e   : > { %p1546_p1 = pnand %p1545_p6, %p1539_p11 }
 0x530   : > { %1549 = shalt.err (!%p1546_p1)
}
 0x531   : > { %s1550_s1 = scalar_lea.hbm %s895_s8, 128  ;;  %s1554_s6 = scalar_lea.hbm %s2210_s22, 256 }
 0x532   : > { %p1551_p3 = scmp.ne.s32.totalorder %s895_s8, %s1550_s1  ;;  %p1555_p12 = scmp.lt.s32.totalorder %s895_s8, %s2210_s22 }
 0x533   : > { %p1556_p13 = scmp.lt.s32.totalorder %s1554_s6, %s1550_s1 }
 0x534   : > { %p1552_p7 = pnand %p1551_p3, %p2211_p10 }
 0x535   : > { %p1557_p4 = por %p1556_p13, %p1555_p12 }
 0x536   : > { %p1553_p5 = pneg %p1552_p7 }
 0x538   : > { %p1558_p2 = pnand %p1557_p4, %p1553_p5 }
 0x53a   : > { %1561 = shalt.err (!%p1558_p2)
}
 0x53b   : > { %1213 = dma.vmem_to_hbm [thread:$0]  (%p2211_p10), %s898_s19, 128, %s895_s8, %s884_s24  }
 0x53c PF: > { %s2212_s7 = sld [smem:[#allocation27_spill]] }
 0x53d   : > { %s2213_s13 = sld [smem:[#allocation22_spill]] }
 0x53e   : > { %s2214_s5 = sld [smem:[#allocation29_spill]] }
 0x542   : > { %p1242_p9 = scmp.ge.s32.totalorder %s2212_s7, 2 }
 0x543   : > { %s909_s18 = sand.u32 1, %s2213_s13  }
 0x544   : > { %p2215_p11 = scmp.ne.s32.totalorder %s2214_s5, 0  ;;  %s910_s27 = scalar_lea.sflag [#allocation5], %s909_s18 }
 0x546   : > { %p1238_p8 = pnand %p1242_p9, %p2215_p11 }
 0x548   : > { %p1239_p0 = pneg %p1238_p8 }
 0x54a   : > { %1623 = dma.done.wait (%p1239_p0), %s910_s27, 128  }
 0x54b   : > { %1625 = vsyncadd (%p1239_p0), %s910_s27, 4294967168  ;;  %s33_s15 = sadd.s32 1, %s2212_s7   ;;  %s2216_s26 = sld [smem:[#allocation21_spill]] }
 0x54c   : > { %p30_p6 = scmp.ge.s32.totalorder %s33_s15, 18   ;;  %s2217_s29 = sld [smem:[#allocation32_spill]] }
 0x54d   : > { %s2218_s12 = sld [smem:[#allocation23_spill]]  ;;  %s2223_s27 = smov %s1632_s28 }
 0x54e   : > { %s2219_s10 = sld [smem:[#allocation34_spill]]  ;;  %s2225_s30 = smov %s1644_s9 }
 0x54f   : > { %s2220_s11 = sld [smem:[#allocation26_spill]] }
 0x550   : > { %s2221_s13 = sld [smem:[#allocation30_spill]] }
 0x551   : > { %s2222_s2 = sld [smem:[#allocation31_spill]]  ;;  %s2224_s28 = smov %s2216_s26 }
 0x553   : > { %s2226_s9 = smov %s2218_s12  ;;  %s2227_s12 = smov %s1664_s14 }
 0x554   :  { %32 = sbr.rel (!%p30_p6) target bundleno = 23 (0x17), region = 177 }
 0x557   : > { %s2228_s14 = smov %s2222_s2 }
 0x559   :  { %915 = vsyncpa [#allocation4], 1 }
 0x55a   :  { %917 = vsyncpa [#allocation4 + $0x1], 1 }
 0x55b   :  { %918 = vsyncpa [#allocation7], 1 }
 0x55c   :  { %920 = vsyncpa [#allocation7 + $0x1], 1 }
 0x55d   :  { %921 = vsyncpa [#allocation10], 1 }
 0x55e   :  { %923 = vsyncpa [#allocation10 + $0x1], 1 }
 0x55f   :  { %924 = vsyncpa [#allocation13], 1 }
 0x560   :  { %926 = vsyncpa [#allocation13 + $0x1], 1 }
 0x561   :  { %927 = vsyncpa [#allocation5], 1 }
 0x562   :  { %929 = vsyncpa [#allocation5 + $0x1], 1 }

</bundles_post_ra>
